<compile_context>
chip_gen: v6e
topology: v6e:2x2x1
jax: 0.10.0
libtpu: 0.0.40
codegen_flags: <defaults>
</compile_context>

<pallas_src>
import jax
import jax.numpy as jnp
from jax.experimental import pallas as pl
from jax.experimental.pallas import tpu as pltpu

_LANE = 128
_SUBLANE = 8


def _round_up(n, m):
    return ((n + m - 1) // m) * m


def _vmem_tile_bytes(rows, cols, itemsize=4):
    """VMEM footprint of a (rows, cols) f32 array in native (8,128) tiling."""
    return _round_up(max(int(rows), 1), _SUBLANE) * _round_up(
        max(int(cols), 1), _LANE) * itemsize


def _make_scaling_kernel(num_layers):
    """Kernel refs: (x_ref, w0, b0, w1, b1, ..., out_ref)."""

    def kernel(x_ref, *refs):
        out_ref = refs[-1]
        params = refs[:-1]
        h = x_ref[...]
        for i in range(num_layers):
            w = params[2 * i][...]
            b = params[2 * i + 1][...]
            # MXU matmul with f32 accumulation, bias broadcast, tanh on the EUP.
            h = jnp.tanh(jnp.dot(h, w, preferred_element_type=jnp.float32) + b)
        out_ref[...] = h.astype(out_ref.dtype)

    return kernel


def _pick_tm(B, dims, target_tm, vmem_budget):
    """Batch-tile size: VMEM-budgeted, multiple of 8, grid >= 2 when possible."""
    in_d, out_d, max_d = dims[0], dims[-1], max(dims)
    # VMEM bytes per batch row: double-buffered x/out tiles + ~2 live activation
    # slabs (lane-padded layout inside VMEM).
    per_row = 4 * (2 * (_round_up(in_d, _LANE) + _round_up(out_d, _LANE))
                   + 2 * _round_up(max_d, _LANE))
    tm_vmem = max(_SUBLANE, (vmem_budget // per_row) // _SUBLANE * _SUBLANE)
    tm = min(_round_up(max(int(target_tm), _SUBLANE), _SUBLANE), tm_vmem)
    if B > _SUBLANE:
        # Keep grid length >= 2 so the "parallel" batch axis can shard across
        # the two TensorCores on v7x.
        tm = min(tm, _round_up(pl.cdiv(B, 2), _SUBLANE))
    if tm >= B:
        tm = B  # single full-extent block (legal even when B % 8 != 0)
    return max(tm, 1)


def scaling_forward(x, weights, biases, *, tm=2048):
    """Fused MLP forward: h -> tanh(h @ W_i + b_i) for every layer.

    Args:
      x:        (B, input_dim) float32.
      weights:  list of (in_i, out_i) float32 arrays (already transposed vs torch).
      biases:   list of (out_i,) float32 arrays.
    Returns:
      (B, out_dim) array, out_dim = weights[-1].shape[1].
    """
    num_layers = len(weights)
    B, in_dim = x.shape
    out_dim = int(weights[-1].shape[1])
    dims = [in_dim] + [int(w.shape[1]) for w in weights]

    # Budget well under v7x's 64 MiB physical VMEM per TC; we also set
    # vmem_limit_bytes explicitly below so v5e's 16 MiB default scoped window
    # is not a constraint.
    vmem_budget = 40 << 20
    tm = _pick_tm(B, dims, tm, vmem_budget)
    grid = (pl.cdiv(B, tm),)

    biases2d = [b.reshape(1, -1) for b in biases]

    # Batch tile moves with the grid (partial last block masked by Pallas);
    # parameters are full-extent, constant across steps and single-buffered.
    in_specs = [pl.BlockSpec((tm, in_dim), lambda i: (i, 0))]
    flat_params = []
    for w, b in zip(weights, biases2d):
        in_specs.append(
            pl.BlockSpec(w.shape, lambda i: (0, 0), pipeline_mode=pl.Buffered(1)))
        in_specs.append(
            pl.BlockSpec(b.shape, lambda i: (0, 0), pipeline_mode=pl.Buffered(1)))
        flat_params.extend([w, b])

    out_spec = pl.BlockSpec((tm, out_dim), lambda i: (i, 0))

    # Explicit VMEM budget: single-buffered params + double-buffered I/O tiles
    # + live activation slabs; capped at 64 MiB (v7x physical VMEM per TC).
    param_vmem = sum(_vmem_tile_bytes(*a.shape) for a in flat_params)
    io_vmem = 2 * (_vmem_tile_bytes(tm, in_dim) + _vmem_tile_bytes(tm, out_dim))
    act_vmem = 2 * _vmem_tile_bytes(tm, max(dims))
    vmem_limit = int(
        min(64 << 20, max(16 << 20, (param_vmem + io_vmem + act_vmem) * 2)))

    # Advisory cost estimate (real, unpadded I/O bytes) for XLA's scheduler.
    itemsize = 4
    flops = 2 * B * sum(int(w.shape[0]) * int(w.shape[1]) for w in weights)
    transcendentals = B * sum(int(w.shape[1]) for w in weights)
    bytes_accessed = itemsize * (B * in_dim + B * out_dim
                                 + sum(int(a.size) for a in flat_params))
    cost = pl.CostEstimate(flops=flops, transcendentals=transcendentals,
                           bytes_accessed=bytes_accessed)

    kernel = _make_scaling_kernel(num_layers)

    return pl.pallas_call(
        kernel,
        out_shape=jax.ShapeDtypeStruct((B, out_dim), x.dtype),
        grid=grid,
        in_specs=in_specs,
        out_specs=out_spec,
        compiler_params=pltpu.CompilerParams(
            dimension_semantics=("parallel",),
            vmem_limit_bytes=vmem_limit,
        ),
        cost_estimate=cost,
    )(x, *flat_params)


def init_scaling_params(key, input_dim, nh=None, n_layers=1):
    """Init matching the torch module's layer shapes (weights pre-transposed).

    Uses the same U(-1/sqrt(fan_in), 1/sqrt(fan_in)) scheme as torch.nn.Linear.
    """
    if nh is None:
        nh = input_dim
    dims = [(input_dim, nh)] + [(nh, nh)] * n_layers + [(nh, input_dim)]
    weights, biases = [], []
    for (fan_in, fan_out) in dims:
        key, kw, kb = jax.random.split(key, 3)
        bound = 1.0 / jnp.sqrt(fan_in)
        weights.append(jax.random.uniform(
            kw, (fan_in, fan_out), jnp.float32, minval=-bound, maxval=bound))
        biases.append(jax.random.uniform(
            kb, (fan_out,), jnp.float32, minval=-bound, maxval=bound))
    return weights, biases


def scaling_reference(x, weights, biases):
    h = x
    for w, b in zip(weights, biases):
        h = jnp.tanh(h @ w + b)
    return h


if __name__ == "__main__":
    key = jax.random.PRNGKey(0)

    # Config 1: module defaults (nh = input_dim = 16); grid of 2 with a
    # partial boundary block (100 = 56 + 44).
    key, kx1, kp1 = jax.random.split(key, 3)
    batch, input_dim, n_layers = 100, 16, 1
    x1 = jax.random.normal(kx1, (batch, input_dim), jnp.float32)
    w1, b1 = init_scaling_params(kp1, input_dim, nh=None, n_layers=n_layers)

    out1 = jax.block_until_ready(scaling_forward(x1, w1, b1))
    ref1 = scaling_reference(x1, w1, b1)
    assert out1.shape == (batch, input_dim)
    assert jnp.allclose(out1, ref1, atol=1e-5, rtol=1e-5), "mismatch (config 1)"

    # Config 2: wider hidden (nh=48), deeper stack, odd batch (37 = 24 + 13
    # partial block); exercises differing in/hidden/out feature widths.
    key, kx2, kp2 = jax.random.split(key, 3)
    x2 = jax.random.normal(kx2, (37, 24), jnp.float32)
    w2, b2 = init_scaling_params(kp2, 24, nh=48, n_layers=2)

    out2 = jax.block_until_ready(scaling_forward(x2, w2, b2))
    ref2 = scaling_reference(x2, w2, b2)
    assert out2.shape == (37, 24)
    assert jnp.allclose(out2, ref2, atol=1e-5, rtol=1e-5), "mismatch (config 2)"

    # Config 3: batch large enough to hit the default tm target and a >2-step grid.
    key, kx3, kp3 = jax.random.split(key, 3)
    x3 = jax.random.normal(kx3, (5000, 16), jnp.float32)
    w3, b3 = init_scaling_params(kp3, 16, nh=None, n_layers=1)

    out3 = jax.block_until_ready(scaling_forward(x3, w3, b3))
    ref3 = scaling_reference(x3, w3, b3)
    assert out3.shape == (5000, 16)
    assert jnp.allclose(out3, ref3, atol=1e-5, rtol=1e-5), "mismatch (config 3)"

    print("KERNEL_OK")
</pallas_src>

<mosaic_0001>
module attributes {stable_mosaic.version = 11 : i64} {
  func.func @kernel(%arg0: i32, %arg1: memref<56x16xf32, #tpu.memory_space<vmem>>, %arg2: memref<16x16xf32, #tpu.memory_space<vmem>>, %arg3: memref<1x16xf32, #tpu.memory_space<vmem>>, %arg4: memref<16x16xf32, #tpu.memory_space<vmem>>, %arg5: memref<1x16xf32, #tpu.memory_space<vmem>>, %arg6: memref<16x16xf32, #tpu.memory_space<vmem>>, %arg7: memref<1x16xf32, #tpu.memory_space<vmem>>, %arg8: memref<56x16xf32, #tpu.memory_space<vmem>>) attributes {dimension_semantics = [#tpu.dimension_semantics<parallel>], iteration_bounds = array<i64: 2>, scalar_prefetch = 0 : i64, scratch_operands = 0 : i64, tpu.core_type = #tpu.core_type<tc>, window_params = [{transform_indices = @transform_0, window_bounds = array<i64: 56, 16>}, {pipeline_mode = #tpu.pipeline_mode<synchronous>, transform_indices = @transform_1, window_bounds = array<i64: 16, 16>}, {pipeline_mode = #tpu.pipeline_mode<synchronous>, transform_indices = @transform_2, window_bounds = array<i64: 1, 16>}, {pipeline_mode = #tpu.pipeline_mode<synchronous>, transform_indices = @transform_3, window_bounds = array<i64: 16, 16>}, {pipeline_mode = #tpu.pipeline_mode<synchronous>, transform_indices = @transform_4, window_bounds = array<i64: 1, 16>}, {pipeline_mode = #tpu.pipeline_mode<synchronous>, transform_indices = @transform_5, window_bounds = array<i64: 16, 16>}, {pipeline_mode = #tpu.pipeline_mode<synchronous>, transform_indices = @transform_6, window_bounds = array<i64: 1, 16>}, {transform_indices = @transform_7, window_bounds = array<i64: 56, 16>}]} {
    %c0 = arith.constant 0 : index
    %c0_0 = arith.constant 0 : index
    %0 = vector.load %arg1[%c0, %c0_0] : memref<56x16xf32, #tpu.memory_space<vmem>>, vector<56x16xf32>
    %c0_1 = arith.constant 0 : index
    %c0_2 = arith.constant 0 : index
    %1 = vector.load %arg2[%c0_1, %c0_2] : memref<16x16xf32, #tpu.memory_space<vmem>>, vector<16x16xf32>
    %c0_3 = arith.constant 0 : index
    %c0_4 = arith.constant 0 : index
    %2 = vector.load %arg3[%c0_3, %c0_4] : memref<1x16xf32, #tpu.memory_space<vmem>>, vector<1x16xf32>
    %cst = arith.constant dense<0.000000e+00> : vector<56x16xf32>
    %3 = tpu.matmul %0, %1, %cst {dimension_numbers = #tpu.dot_dimension_numbers<[1], [0], [0], [1], [0, 0, 1, 1], [], []>} : vector<56x16xf32>, vector<16x16xf32>, vector<56x16xf32> -> vector<56x16xf32>
    %4 = vector.broadcast %2 : vector<1x16xf32> to vector<56x16xf32>
    %5 = arith.addf %3, %4 : vector<56x16xf32>
    %6 = math.tanh %5 : vector<56x16xf32>
    %c0_5 = arith.constant 0 : index
    %c0_6 = arith.constant 0 : index
    %7 = vector.load %arg4[%c0_5, %c0_6] : memref<16x16xf32, #tpu.memory_space<vmem>>, vector<16x16xf32>
    %c0_7 = arith.constant 0 : index
    %c0_8 = arith.constant 0 : index
    %8 = vector.load %arg5[%c0_7, %c0_8] : memref<1x16xf32, #tpu.memory_space<vmem>>, vector<1x16xf32>
    %cst_9 = arith.constant dense<0.000000e+00> : vector<56x16xf32>
    %9 = tpu.matmul %6, %7, %cst_9 {dimension_numbers = #tpu.dot_dimension_numbers<[1], [0], [0], [1], [0, 0, 1, 1], [], []>} : vector<56x16xf32>, vector<16x16xf32>, vector<56x16xf32> -> vector<56x16xf32>
    %10 = vector.broadcast %8 : vector<1x16xf32> to vector<56x16xf32>
    %11 = arith.addf %9, %10 : vector<56x16xf32>
    %12 = math.tanh %11 : vector<56x16xf32>
    %c0_10 = arith.constant 0 : index
    %c0_11 = arith.constant 0 : index
    %13 = vector.load %arg6[%c0_10, %c0_11] : memref<16x16xf32, #tpu.memory_space<vmem>>, vector<16x16xf32>
    %c0_12 = arith.constant 0 : index
    %c0_13 = arith.constant 0 : index
    %14 = vector.load %arg7[%c0_12, %c0_13] : memref<1x16xf32, #tpu.memory_space<vmem>>, vector<1x16xf32>
    %cst_14 = arith.constant dense<0.000000e+00> : vector<56x16xf32>
    %15 = tpu.matmul %12, %13, %cst_14 {dimension_numbers = #tpu.dot_dimension_numbers<[1], [0], [0], [1], [0, 0, 1, 1], [], []>} : vector<56x16xf32>, vector<16x16xf32>, vector<56x16xf32> -> vector<56x16xf32>
    %16 = vector.broadcast %14 : vector<1x16xf32> to vector<56x16xf32>
    %17 = arith.addf %15, %16 : vector<56x16xf32>
    %18 = math.tanh %17 : vector<56x16xf32>
    %c0_15 = arith.constant 0 : index
    %c0_16 = arith.constant 0 : index
    %19 = vector.load %arg8[%c0_15, %c0_16] : memref<56x16xf32, #tpu.memory_space<vmem>>, vector<56x16xf32>
    tpu.vector_store %arg8[%c0_15, %c0_16], %18 {strides = array<i32>} : memref<56x16xf32, #tpu.memory_space<vmem>>, vector<56x16xf32>,
    return
  }
  func.func @transform_0(%arg0: i32) -> (i32, i32) {
    %c0_i32 = arith.constant 0 : i32
    %c0_i32_0 = arith.constant 0 : i32
    return %arg0, %c0_i32 : i32, i32
  }
  func.func @transform_1(%arg0: i32) -> (i32, i32) {
    %c0_i32 = arith.constant 0 : i32
    %c0_i32_0 = arith.constant 0 : i32
    %c0_i32_1 = arith.constant 0 : i32
    return %c0_i32, %c0_i32_0 : i32, i32
  }
  func.func @transform_2(%arg0: i32) -> (i32, i32) {
    %c0_i32 = arith.constant 0 : i32
    %c0_i32_0 = arith.constant 0 : i32
    %c0_i32_1 = arith.constant 0 : i32
    return %c0_i32, %c0_i32_0 : i32, i32
  }
  func.func @transform_3(%arg0: i32) -> (i32, i32) {
    %c0_i32 = arith.constant 0 : i32
    %c0_i32_0 = arith.constant 0 : i32
    %c0_i32_1 = arith.constant 0 : i32
    return %c0_i32, %c0_i32_0 : i32, i32
  }
  func.func @transform_4(%arg0: i32) -> (i32, i32) {
    %c0_i32 = arith.constant 0 : i32
    %c0_i32_0 = arith.constant 0 : i32
    %c0_i32_1 = arith.constant 0 : i32
    return %c0_i32, %c0_i32_0 : i32, i32
  }
  func.func @transform_5(%arg0: i32) -> (i32, i32) {
    %c0_i32 = arith.constant 0 : i32
    %c0_i32_0 = arith.constant 0 : i32
    %c0_i32_1 = arith.constant 0 : i32
    return %c0_i32, %c0_i32_0 : i32, i32
  }
  func.func @transform_6(%arg0: i32) -> (i32, i32) {
    %c0_i32 = arith.constant 0 : i32
    %c0_i32_0 = arith.constant 0 : i32
    %c0_i32_1 = arith.constant 0 : i32
    return %c0_i32, %c0_i32_0 : i32, i32
  }
  func.func @transform_7(%arg0: i32) -> (i32, i32) {
    %c0_i32 = arith.constant 0 : i32
    %c0_i32_0 = arith.constant 0 : i32
    return %arg0, %c0_i32 : i32, i32
  }
}

</mosaic_0001>

<bundles_post_ra>
// kernel: tpu_custom_call.1
= control target key start
LH: loop header
LB: loop body
LE: loop exit
PB: predicated region body
PF: predicated region fallthrough
CT: control target
= control target key end

     0   :  { %s1384_s24 = smov 0   ;;  %s1386_s25 = smov 0   ;;  %s1592_s0 = inlined_call_operand.vmem [shape: f32[100,16], index: 0, kind: input, shape index: {}]   ;;  %s1593_s1 = inlined_call_operand.vmem [shape: f32[16,16], index: 1, kind: input, shape index: {}]   ;;  %s1594_s2 = inlined_call_operand.vmem [shape: f32[1,16], index: 2, kind: input, shape index: {}]   ;;  %s1595_s3 = inlined_call_operand.vmem [shape: f32[16,16], index: 3, kind: input, shape index: {}]   ;;  %s1596_s4 = inlined_call_operand.vmem [shape: f32[1,16], index: 4, kind: input, shape index: {}]   ;;  %s1597_s5 = inlined_call_operand.vmem [shape: f32[16,16], index: 5, kind: input, shape index: {}]   ;;  %s1598_s6 = inlined_call_operand.vmem [shape: f32[1,16], index: 6, kind: input, shape index: {}]   ;;  %s1599_s7 = inlined_call_operand.vmem [shape: f32[100,16], index: 7, kind: output, shape index: {}]  }
   0x1   :  { %s1388_s26 = smov 0  }
   0x2 LB: > { %s1397_s27 = sadd.s32 4294967295, %s1308_s26   ;;  %s1399_s28 = sadd.s32 1, %s1308_s26   ;;  %s1308_s26 = sphi %s1388_s26, %s1606_s26   ;;  %s1304_s25 = sphi %s1386_s25, %s1605_s25   ;;  %s1300_s24 = sphi %s1384_s24, %s1604_s24  }
   0x3   : > { %s173_s29 = ssub.s32 %s1308_s26, %s1399_s28  ;;  %s176_s30 = sadd.s32 1, %s1304_s25 }
   0x4   : > { %p174_p0 = scmp.eq.s32.totalorder %s173_s29, 0  ;;  %p186_p1 = scmp.ne.s32.totalorder %s1304_s25, %s1300_s24 }
   0x5   : > { %p187_p2 = scmp.eq.s32.totalorder %s1397_s27, 1  ;;  %p971_p3 = scmp.ge.s32.totalorder %s1308_s26, 1 }
   0x6   : > { %s1407_s8 = scalar_select %p174_p0, %s1304_s25, %s176_s30  }
   0x7   : > { %p1409_p4 = por %p187_p2, %p186_p1  ;;  %p246_p5 = scmp.lt.s32.totalorder %s1308_s26, 3 }
   0x9   : > { %p247_p6 = pnand %p971_p3, %p246_p5 }
   0xa   : > { %s1417_s12 = smul.u32 (!%p247_p6), 7, %s1397_s27  ;;  %s278_s18 = sand.u32 (!%p247_p6), 1, %s1300_s24  }
   0xb   : > { %250 = sbr.rel (%p247_p6) target bundleno = 728 (0x2d8), region = 48 }
   0xc   : > { %p286_p7 = scmp.lt.s32.totalorder (!%p247_p6), %s1417_s12, 12 }
  0x10   : > { %v308_v0 = vld [vmem:[%s1593_s1 + $0x8] sm:$0xff]  ;;  %v1342_v1 = vmov 0.0   ;;  %v307_v2 = vld [vmem:[%s1593_s1] sm:$0xff]  ;;  %vm1343_vm0 = vmmov 0   ;;  %s287_s15 = scalar_select %p286_p7, %s1417_s12, 12  ;;  %vm316_vm1 = vcmask 130048  }
  0x11   : > { %1037 = vmatprep.subr.mxu0 %v1342_v1  ;;  %1041 = vmatprep.mubr.msk.f32.mxu0 %vm1343_vm0, %v1342_v1  ;;  %v446_v10 = vld [vmem:[%s1595_s3 + $0x8] sm:$0xff]  ;;  %v445_v11 = vld [vmem:[%s1595_s3] sm:$0xff]  ;;  %s734_s24 = ssub.s32 (%p1409_p4), 13, %s1417_s12  ;;  %s1009_s21 = smul.u32 (%p1409_p4), 56, %s1397_s27 }
  0x12   : > { %1038 = vmatpush3.msra.mxu0 %v308_v0  ;;  %1112 = vmatprep.subr.mxu1 %v1342_v1  ;;  %s972_s16 = sshll.u32 %s287_s15, 3  ;;  %v973_v12 = vld [vmem:[%s1594_s2] ss:$0 sm:$0xff]  ;;  %v583_v41 = vld [vmem:[%s1597_s5 + $0x8] sm:$0xff]  ;;  %p735_p8 = scmp.lt.s32.totalorder (%p1409_p4), %s734_s24, 7 }
  0x13   : > { %1039 = vmatprep.subr.mxu0 %v1342_v1  ;;  %1114 = vmatpush3.msra.mxu1 %v308_v0  ;;  %s289_s19 = scalar_lea.vmem %s1592_s0, %s972_s16  ;;  %v582_v42 = vld [vmem:[%s1597_s5] sm:$0xff]  ;;  %s1543_s26 = scalar_lea.vmem (%p1409_p4), %s1599_s7, %s1009_s21  }
  0x14   : > { %1040 = vmatpush3.msra.mxu0 %v307_v2  ;;  %1113 = vmatprep.subr.mxu1 %v1342_v1  ;;  %v300_v3 = vld [vmem:[%s289_s19] sm:$0xff]  ;;  %v301_v5 = vld [vmem:[%s289_s19 + $0x8] sm:$0xff]  ;;  %v302_v7 = vld [vmem:[%s289_s19 + $0x10] sm:$0xff] }
  0x15   : > { %1115 = vmatpush3.msra.mxu1 %v307_v2  ;;  %1053 = vmatprep.mubr.msk.f32.mxu1 %vm1343_vm0, %v1342_v1  ;;  %v304_v4 = vld [vmem:[%s289_s19 + $0x20] sm:$0xff]  ;;  %v305_v6 = vld [vmem:[%s289_s19 + $0x28] sm:$0xff]  ;;  %v306_v8 = vld [vmem:[%s289_s19 + $0x30] sm:$0xff] }
  0x16   : > { %1062 = vmatprep.subr.mxu1 %v1342_v1  ;;  %1087 = vmatprep.subr.mxu0 %v1342_v1  ;;  %v303_v9 = vld [vmem:[%s289_s19 + $0x18] sm:$0xff]  ;;  %v981_v43 = vld [vmem:[%s1596_s4] ss:$0 sm:$0xff]  ;;  %s1116_s19 = smul.u32 56, %s278_s18 }
  0x17   : > { %1042 = vmatmul.mubr.msk.f32.vlgmr.msra.gmra.mxu0 %vm316_vm1, %v300_v3  ;;  %1054 = vmatmul.mubr.msk.f32.vlgmr.msra.gmra.mxu1 %vm316_vm1, %v304_v4 }
  0x18   : > { %1044 = vmatprep.mubr.msk.f32.mxu0 %vm1343_vm0, %v1342_v1  ;;  %1056 = vmatprep.mubr.msk.f32.mxu1 %vm1343_vm0, %v1342_v1  ;;  %s1520_s20 = scalar_lea.vmem [#allocation2], %s1116_s19  }
  0x19   : > { %1063 = vmatpush3.msra.mxu1 %v446_v10  ;;  %1088 = vmatpush3.msra.mxu0 %v583_v41 }
  0x1a   : > { %1064 = vmatprep.subr.mxu1 %v1342_v1  ;;  %1089 = vmatprep.subr.mxu0 %v1342_v1 }
  0x1b   : > { %1045 = vmatmul.mubr.msk.f32.gmra.mxu0 %vm316_vm1, %v301_v5  ;;  %1057 = vmatmul.mubr.msk.f32.gmra.mxu1 %vm316_vm1, %v305_v6 }
  0x1c   : > { %1047 = vmatprep.mubr.msk.f32.mxu0 %vm1343_vm0, %v1342_v1  ;;  %1059 = vmatprep.mubr.msk.f32.mxu1 %vm1343_vm0, %v1342_v1 }
  0x1d   : > { %1065 = vmatpush3.msra.mxu1 %v445_v11  ;;  %1090 = vmatpush3.msra.mxu0 %v582_v42 }
  0x1f   : > { %1048 = vmatmul.mubr.msk.f32.gmra.mxu0 %vm316_vm1, %v302_v7  ;;  %1060 = vmatmul.mubr.msk.f32.gmra.mxu1 %vm316_vm1, %v306_v8 }
  0x20   : > { %1050 = vmatprep.mubr.msk.f32.mxu0 %vm1343_vm0, %v1342_v1  ;;  %1066 = vmatprep.mubr.msk.f32.mxu1 %vm1343_vm0, %v1342_v1 }
  0x23   : > { %1051 = vmatmul.mubr.msk.f32.gmra.mxu0 %vm316_vm1, %v303_v9  ;;  %v989_v9 = vld [vmem:[%s1598_s6] ss:$0 sm:$0xff] }
  0x24   : > { %1091 = vmatprep.mubr.msk.f32.mxu0 %vm1343_vm0, %v1342_v1 }
  0xd7   : > { %v404_v13 = vpop.f32.mrf.mxu0  ;;  %v424_v15 = vpop.f32.mrf.mxu1 }
  0xd8   : > { %v405_v14 = vadd.f32 %v973_v12, %v404_v13  ;;  %v425_v30 = vadd.f32 %v973_v12, %v424_v15 }
  0xd9   : > { %v1043_v16 = vpop.f32.mrf.mxu0  ;;  %v1055_v17 = vpop.f32.mrf.mxu1 }
  0xda   : > { %1208 = vtanh.f32 %v405_v14 }
  0xdb   : > { %v409_v18 = vpop.f32.mrf.mxu0  ;;  %v429_v20 = vpop.f32.mrf.mxu1 }
  0xdc   : > { %v410_v19 = vadd.f32 %v973_v12, %v409_v18  ;;  %v430_v33 = vadd.f32 %v973_v12, %v429_v20 }
  0xdd   : > { %v1046_v21 = vpop.f32.mrf.mxu0  ;;  %v1058_v22 = vpop.f32.mrf.mxu1 }
  0xde   : > { %1210 = vtanh.f32 %v410_v19 }
  0xdf   : > { %v414_v23 = vpop.f32.mrf.mxu0  ;;  %v434_v25 = vpop.f32.mrf.mxu1 }
  0xe0   : > { %v415_v24 = vadd.f32 %v973_v12, %v414_v23  ;;  %v435_v35 = vadd.f32 %v973_v12, %v434_v25 }
  0xe1   : > { %v1049_v26 = vpop.f32.mrf.mxu0  ;;  %v1061_v27 = vpop.f32.mrf.mxu1 }
  0xe2   : > { %1212 = vtanh.f32 %v415_v24 }
  0xe3   : > { %v419_v28 = vpop.f32.mrf.mxu0 }
  0xe4   : > { %v420_v29 = vadd.f32 %v973_v12, %v419_v28 }
  0xe5   : > { %v1052_v31 = vpop.f32.mrf.mxu0 }
  0xe6   : > { %1214 = vtanh.f32 %v420_v29 }
  0xe7   : > { %v1209_v32 = vpop.eup %1208  ;;  %1216 = vtanh.f32 %v425_v30 }
  0xe8   : > { %1067 = vmatmul.mubr.msk.f32.vlgmr.msra.gmra.mxu1 %vm316_vm1, %v1209_v32  ;;  %1218 = vtanh.f32 %v430_v33 }
  0xe9   : > { %1069 = vmatprep.mubr.msk.f32.mxu1 %vm1343_vm0, %v1342_v1  ;;  %1220 = vtanh.f32 %v435_v35 }
  0xeb   : > { %v1211_v34 = vpop.eup %1210 }
  0xec   : > { %1070 = vmatmul.mubr.msk.f32.gmra.mxu1 %vm316_vm1, %v1211_v34 }
  0xed   : > { %1072 = vmatprep.mubr.msk.f32.mxu1 %vm1343_vm0, %v1342_v1 }
  0xef   : > { %v1213_v36 = vpop.eup %1212 }
  0xf0   : > { %1073 = vmatmul.mubr.msk.f32.gmra.mxu1 %vm316_vm1, %v1213_v36 }
  0xf1   : > { %1075 = vmatprep.mubr.msk.f32.mxu1 %vm1343_vm0, %v1342_v1 }
  0xf3   : > { %v1215_v37 = vpop.eup %1214 }
  0xf4   : > { %1076 = vmatmul.mubr.msk.f32.gmra.mxu1 %vm316_vm1, %v1215_v37  ;;  %v1217_v38 = vpop.eup %1216 }
  0xf5   : > { %1078 = vmatprep.mubr.msk.f32.mxu1 %vm1343_vm0, %v1342_v1  ;;  %v1219_v39 = vpop.eup %1218 }
  0xf6   : > { %v1221_v40 = vpop.eup %1220 }
  0xf8   : > { %1079 = vmatmul.mubr.msk.f32.gmra.mxu1 %vm316_vm1, %v1217_v38 }
  0xf9   : > { %1081 = vmatprep.mubr.msk.f32.mxu1 %vm1343_vm0, %v1342_v1 }
  0xfc   : > { %1082 = vmatmul.mubr.msk.f32.gmra.mxu1 %vm316_vm1, %v1219_v39 }
  0xfd   : > { %1084 = vmatprep.mubr.msk.f32.mxu1 %vm1343_vm0, %v1342_v1 }
 0x100   : > { %1085 = vmatmul.mubr.msk.f32.gmra.mxu1 %vm316_vm1, %v1221_v40 }
 0x1a8   : > { %v541_v44 = vpop.f32.mrf.mxu1 }
 0x1a9   : > { %v542_v45 = vadd.f32 %v981_v43, %v541_v44 }
 0x1aa   : > { %v1068_v46 = vpop.f32.mrf.mxu1 }
 0x1ab   : > { %1222 = vtanh.f32 %v542_v45 }
 0x1ac   : > { %v546_v47 = vpop.f32.mrf.mxu1 }
 0x1ad   : > { %v547_v48 = vadd.f32 %v981_v43, %v546_v47 }
 0x1ae   : > { %v1071_v49 = vpop.f32.mrf.mxu1 }
 0x1af   : > { %1224 = vtanh.f32 %v547_v48 }
 0x1b0   : > { %v551_v50 = vpop.f32.mrf.mxu1 }
 0x1b1   : > { %v552_v51 = vadd.f32 %v981_v43, %v551_v50 }
 0x1b2   : > { %v1074_v52 = vpop.f32.mrf.mxu1 }
 0x1b3   : > { %1226 = vtanh.f32 %v552_v51 }
 0x1b4   : > { %v556_v53 = vpop.f32.mrf.mxu1 }
 0x1b5   : > { %v557_v54 = vadd.f32 %v981_v43, %v556_v53 }
 0x1b6   : > { %v1077_v55 = vpop.f32.mrf.mxu1 }
 0x1b7   : > { %1228 = vtanh.f32 %v557_v54 }
 0x1b8   : > { %v1223_v56 = vpop.eup %1222  ;;  %v561_v57 = vpop.f32.mrf.mxu1 }
 0x1b9   : > { %v562_v58 = vadd.f32 %v981_v43, %v561_v57  ;;  %1092 = vmatmul.mubr.msk.f32.vlgmr.msra.gmra.mxu0 %vm316_vm1, %v1223_v56 }
 0x1ba   : > { %v1080_v59 = vpop.f32.mrf.mxu1  ;;  %1094 = vmatprep.mubr.msk.f32.mxu0 %vm1343_vm0, %v1342_v1 }
 0x1bb   : > { %1230 = vtanh.f32 %v562_v58 }
 0x1bc   : > { %v1225_v60 = vpop.eup %1224  ;;  %v566_v61 = vpop.f32.mrf.mxu1 }
 0x1bd   : > { %v567_v62 = vadd.f32 %v981_v43, %v566_v61  ;;  %1095 = vmatmul.mubr.msk.f32.gmra.mxu0 %vm316_vm1, %v1225_v60 }
 0x1be   : > { %v1083_v63 = vpop.f32.mrf.mxu1  ;;  %1097 = vmatprep.mubr.msk.f32.mxu0 %vm1343_vm0, %v1342_v1 }
 0x1bf   : > { %1232 = vtanh.f32 %v567_v62 }
 0x1c0   : > { %v1227_v0 = vpop.eup %1226  ;;  %v571_v2 = vpop.f32.mrf.mxu1 }
 0x1c1   : > { %v572_v3 = vadd.f32 %v981_v43, %v571_v2  ;;  %1098 = vmatmul.mubr.msk.f32.gmra.mxu0 %vm316_vm1, %v1227_v0 }
 0x1c2   : > { %v1086_v4 = vpop.f32.mrf.mxu1  ;;  %1100 = vmatprep.mubr.msk.f32.mxu0 %vm1343_vm0, %v1342_v1 }
 0x1c3   : > { %1234 = vtanh.f32 %v572_v3 }
 0x1c4   : > { %v1229_v5 = vpop.eup %1228 }
 0x1c5   : > { %1101 = vmatmul.mubr.msk.f32.gmra.mxu0 %vm316_vm1, %v1229_v5 }
 0x1c6   : > { %1103 = vmatprep.mubr.msk.f32.mxu0 %vm1343_vm0, %v1342_v1 }
 0x1c8   : > { %v1231_v6 = vpop.eup %1230 }
 0x1c9   : > { %1104 = vmatmul.mubr.msk.f32.gmra.mxu0 %vm316_vm1, %v1231_v6 }
 0x1ca   : > { %1106 = vmatprep.mubr.msk.f32.mxu0 %vm1343_vm0, %v1342_v1 }
 0x1cc   : > { %v1233_v7 = vpop.eup %1232 }
 0x1cd   : > { %1107 = vmatmul.mubr.msk.f32.gmra.mxu0 %vm316_vm1, %v1233_v7 }
 0x1ce   : > { %1109 = vmatprep.mubr.msk.f32.mxu0 %vm1343_vm0, %v1342_v1 }
 0x1d0   : > { %v1235_v8 = vpop.eup %1234 }
 0x1d1   : > { %1110 = vmatmul.mubr.msk.f32.gmra.mxu0 %vm316_vm1, %v1235_v8 }
 0x279   : > { %v678_v10 = vpop.f32.mrf.mxu0 }
 0x27a   : > { %v679_v11 = vadd.f32 %v989_v9, %v678_v10 }
 0x27b   : > { %v1093_v12 = vpop.f32.mrf.mxu0 }
 0x27c   : > { %1236 = vtanh.f32 %v679_v11 }
 0x27d   : > { %v683_v13 = vpop.f32.mrf.mxu0 }
 0x27e   : > { %v684_v14 = vadd.f32 %v989_v9, %v683_v13 }
 0x27f   : > { %v1096_v15 = vpop.f32.mrf.mxu0 }
 0x280   : > { %1238 = vtanh.f32 %v684_v14 }
 0x281   : > { %v688_v16 = vpop.f32.mrf.mxu0 }
 0x282   : > { %v689_v17 = vadd.f32 %v989_v9, %v688_v16 }
 0x283   : > { %v1099_v1 = vpop.f32.mrf.mxu0 }
 0x284   : > { %1240 = vtanh.f32 %v689_v17 }
 0x285   : > { %v693_v18 = vpop.f32.mrf.mxu0 }
 0x286   : > { %v694_v19 = vadd.f32 %v989_v9, %v693_v18 }
 0x287   : > { %v1102_v20 = vpop.f32.mrf.mxu0 }
 0x288   : > { %1242 = vtanh.f32 %v694_v19 }
 0x289   : > { %v1237_v21 = vpop.eup %1236  ;;  %v698_v22 = vpop.f32.mrf.mxu0 }
 0x28a   : > { %719 = vst.msk [vmem:[%s1520_s20] sm:$0xff] %vm316_vm1, %v1237_v21  ;;  %v699_v23 = vadd.f32 %v989_v9, %v698_v22 }
 0x28b   : > { %v1105_v24 = vpop.f32.mrf.mxu0 }
 0x28c   : > { %1244 = vtanh.f32 %v699_v23 }
 0x28d   : > { %v1239_v25 = vpop.eup %1238  ;;  %v703_v26 = vpop.f32.mrf.mxu0 }
 0x28e   : > { %720 = vst.msk [vmem:[%s1520_s20 + $0x8] sm:$0xff] %vm316_vm1, %v1239_v25  ;;  %v704_v27 = vadd.f32 %v989_v9, %v703_v26 }
 0x28f   : > { %v1108_v28 = vpop.f32.mrf.mxu0 }
 0x290   : > { %1246 = vtanh.f32 %v704_v27 }
 0x291   : > { %v1241_v29 = vpop.eup %1240  ;;  %v708_v30 = vpop.f32.mrf.mxu0 }
 0x292   : > { %721 = vst.msk [vmem:[%s1520_s20 + $0x10] sm:$0xff] %vm316_vm1, %v1241_v29  ;;  %v709_v31 = vadd.f32 %v989_v9, %v708_v30 }
 0x293   : > { %v1111_v32 = vpop.f32.mrf.mxu0 }
 0x294   : > { %1248 = vtanh.f32 %v709_v31 }
 0x295   : > { %v1243_v33 = vpop.eup %1242 }
 0x296   : > { %722 = vst.msk [vmem:[%s1520_s20 + $0x18] sm:$0xff] %vm316_vm1, %v1243_v33 }
 0x299   : > { %v1245_v34 = vpop.eup %1244 }
 0x29a   : > { %723 = vst.msk [vmem:[%s1520_s20 + $0x20] sm:$0xff] %vm316_vm1, %v1245_v34 }
 0x29d   : > { %v1247_v35 = vpop.eup %1246 }
 0x29e   : > { %724 = vst.msk [vmem:[%s1520_s20 + $0x28] sm:$0xff] %vm316_vm1, %v1247_v35  ;;  %732 = sbr.rel (!%p1409_p4) target bundleno = 728 (0x2d8), region = 52 }
 0x2a1   : > { %v1249_v36 = vpop.eup %1248 }
 0x2a2   : > { %725 = vst.msk [vmem:[%s1520_s20 + $0x30] sm:$0xff] %vm316_vm1, %v1249_v36 }
 0x2a3   : > { %s1608_s24 = smov (!%p735_p8, %s734_s24), 7 }
 0x2a4   : > { %s997_s29 = sshll.u32 %s1608_s24, 7 }
 0x2a5   : > { %p1000_p9 = scmp.eq.s32.totalorder %s997_s29, 0 }
 0x2a6   : > { %1250 = sdivrem.u32 (!%p1000_p9), %s1608_s24, 7 }
 0x2a7   : > { %743 = sbr.rel (%p1000_p9) target bundleno = 728 (0x2d8), region = 56 }
 0x2af   : > { %s1549_s9 = spop.drf %1250 }
 0x2b0   : > { %p1001_p10 = scmp.le.s32.totalorder %s1549_s9, 0 }
 0x2b1   : > { %s1601_s27 = smov (!%p1001_p10), %s1543_s26  ;;  %s1602_s12 = smov (!%p1001_p10), %s1520_s20 }
 0x2b2   : > { %924 = sbr.rel (%p1001_p10) target bundleno = 703 (0x2bf), region = 132  ;;  %s1558_s30 = smov (!%p1001_p10), 0  }
 0x2b3   : > { %s1560_s10 = smov (!%p1001_p10), 0  }
 0x2b7 LB: >> { %v820_v37 = vld [vmem:[%s1316_s12] sm:$0xff]  ;;  %v822_v38 = vld [vmem:[%s1316_s12 + $0x8] sm:$0xff]  ;;  %v824_v39 = vld [vmem:[%s1316_s12 + $0x10] sm:$0xff]  ;;  %s834_s11 = sadd.s32 1, %s1320_s30  ;;  %s814_s10 = sadd.s32 1, %s1324_s10   ;;  %s1324_s10 = sphi %s1560_s10, %s814_s10   ;;  %s1320_s30 = sphi %s1558_s30, %s1603_s30   ;;  %s1316_s12 = sphi %s1602_s12, %s839_s12   ;;  %s1312_s27 = sphi %s1601_s27, %s840_s27  }
 0x2b8   : >> { %821 = vst [vmem:[%s1312_s27] sm:$0xff] %v820_v37  ;;  %823 = vst [vmem:[%s1312_s27 + $0x8] sm:$0xff] %v822_v38  ;;  %v826_v40 = vld [vmem:[%s1316_s12 + $0x18] sm:$0xff]  ;;  %v828_v41 = vld [vmem:[%s1316_s12 + $0x20] sm:$0xff]  ;;  %p835_p11 = scmp.ge.s32.totalorder %s834_s11, %s1549_s9  ;;  %p813_p12 = scmp.ge.s32.totalorder %s814_s10, %s1549_s9 }
 0x2b9   : >> { %825 = vst [vmem:[%s1312_s27 + $0x10] sm:$0xff] %v824_v39  ;;  %v830_v42 = vld [vmem:[%s1316_s12 + $0x28] sm:$0xff]  ;;  %827 = vst [vmem:[%s1312_s27 + $0x18] sm:$0xff] %v826_v40  ;;  %v832_v43 = vld [vmem:[%s1316_s12 + $0x30] sm:$0xff] }
 0x2ba   : >> { %829 = vst [vmem:[%s1312_s27 + $0x20] sm:$0xff] %v828_v41  ;;  %831 = vst [vmem:[%s1312_s27 + $0x28] sm:$0xff] %v830_v42  ;;  %s1610_s11 = smov (%p835_p11, %s834_s11), 0  ;;  %816 = sbr.rel (!%p813_p12) target bundleno = 695 (0x2b7), region = 138 }
 0x2bb   : >> { %833 = vst [vmem:[%s1312_s27 + $0x30] sm:$0xff] %v832_v43  ;;  %s837_s13 = smul.u32 56, %s1610_s11  ;;  %s1603_s30 = smov %s1610_s11 }
 0x2bd   : >> { %s839_s12 = scalar_lea.vmem %s1520_s20, %s837_s13 [#allocation2]   ;;  %s840_s27 = scalar_lea.vmem %s1543_s26, %s837_s13  }
 0x2bf PF: > { %1252 = sdivrem.u32 %s1608_s24, 7 }
 0x2c0   : > { %s1002_s14 = smul.u32 56, %s1549_s9 }
 0x2c2   : > { %s845_s15 = scalar_lea.vmem %s1520_s20, %s1002_s14 [#allocation2]   ;;  %s847_s16 = scalar_lea.vmem %s1543_s26, %s1002_s14  }
 0x2c8   : > { %s1253_s17 = spop.drf %1252 }
 0x2c9   : > { %p1004_p13 = scmp.le.s32.totalorder %s1253_s17, 0 }
 0x2ca   : > { %s1326_s18 = smov (!%p1004_p13), %s847_s16   ;;  %s1330_s19 = smov (!%p1004_p13), %s845_s15  }
 0x2cb   : > { %938 = sbr.rel (%p1004_p13) target bundleno = 728 (0x2d8), region = 143  ;;  %s1334_s21 = smov (!%p1004_p13), 0  }
 0x2cc   : > { %s1338_s22 = smov (!%p1004_p13), 0  }
 0x2d0 LB: >> { %v857_v44 = vld [vmem:[%s1332_s19] sm:$0xff]  ;;  %s859_s23 = sadd.s32 1, %s1336_s21  ;;  %s851_s22 = sadd.s32 1, %s1340_s22   ;;  %s1340_s22 = sphi %s1338_s22, %s851_s22   ;;  %s1336_s21 = sphi %s1334_s21, %s1335_s21   ;;  %s1332_s19 = sphi %s1330_s19, %s864_s19   ;;  %s1328_s18 = sphi %s1326_s18, %s865_s18  }
 0x2d1   : >> { %858 = vst [vmem:[%s1328_s18] sm:$0xff] %v857_v44  ;;  %p860_p0 = scmp.ge.s32.totalorder %s859_s23, %s1253_s17  ;;  %p850_p1 = scmp.ge.s32.totalorder %s851_s22, %s1253_s17 }
 0x2d3   : >> { %s1612_s23 = smov (%p860_p0, %s859_s23), 0  ;;  %853 = sbr.rel (!%p850_p1) target bundleno = 720 (0x2d0), region = 149 }
 0x2d4   : >> { %s1005_s20 = sshll.u32 %s1612_s23, 3  ;;  %s1335_s21 = smov %s1612_s23  }
 0x2d5   : >> { %s864_s19 = scalar_lea.vmem %s845_s15, %s1005_s20 [#allocation2]   ;;  %s865_s18 = scalar_lea.vmem %s847_s16, %s1005_s20  }
 0x2d8 PF: > { %p14_p2 = scmp.ge.s32.totalorder %s1399_s28, 4   ;;  %s1604_s24 = smov %s1304_s25 }
 0x2d9   : > { %s1605_s25 = smov %s1407_s8  ;;  %s1606_s26 = smov %s1399_s28 }
 0x2da   :  { %16 = sbr.rel (!%p14_p2) target bundleno = 2 (0x2), region = 160 }

</bundles_post_ra>
